<compile_context>
chip_gen: v5e
topology: v5e:2x2
jax: 0.10.0
libtpu: 0.0.40
codegen_flags: <defaults>
</compile_context>

<pallas_src>
import functools

import jax
import jax.numpy as jnp
from jax.experimental import pallas as pl
from jax.experimental.pallas import tpu as pltpu


# Finite "-inf" for mask_to_bias (avoids -inf - (-inf) = NaN on fully masked
# rows; semantic divergence vs. torch sdpa's NaN behavior, documented).
_MASK_BIAS_MIN = float(jnp.finfo(jnp.float32).min) / 2.0


def _vmem_limit_bytes() -> int:
    """~75% of physical VMEM per generation (v5e/v6e 128 MiB -> 96 MiB,
    v7x 64 MiB -> 48 MiB), with a conservative fallback."""
    try:
        cap = int(pltpu.get_tpu_info().vmem_capacity_bytes)
        return min(max(cap * 3 // 4, 16 * 1024 * 1024), 100 * 1024 * 1024)
    except Exception:
        return 32 * 1024 * 1024


# --------------------------------------------------------------------------- #
# Fused kernel: QKV projection + per-head attention + output projection.
# --------------------------------------------------------------------------- #
def _fused_mha_kernel(x_ref, bias_ref, wqkv_ref, bqkv_ref, wout_ref, bout_ref,
                      o_ref, *, n_heads):
    # x_ref:    (1, L, Dm)      bias_ref: (1, 1, L)  (additive key bias, f32)
    # wqkv_ref: (Dm, 3*Dm)      bqkv_ref: (1, 3*Dm)  (Q part pre-scaled by 1/sqrt(D))
    # wout_ref: (Dm, Dm)        bout_ref: (1, Dm)
    # o_ref:    (1, L, Dm)      -- lane-dense output slab
    _, L, d_model = x_ref.shape
    H = n_heads
    D = d_model // H
    dt = x_ref.dtype

    x2d = x_ref[0]                                               # (L, Dm)

    # ---- QKV projection: ONE MXU matmul, N = 3*d_model (good MXU fill) ----
    qkv = jnp.dot(x2d, wqkv_ref[...], preferred_element_type=jnp.float32)
    qkv = qkv + bqkv_ref[...].astype(jnp.float32)                # (L, 3*Dm) f32
    qkv_c = qkv.astype(dt)                                       # MXU operand dtype

    bias = bias_ref[0]                                           # (1, L) f32

    # ---- per-head attention + fused output projection ----
    # Static Python loop over heads: the head split is a static lane slice of
    # the VMEM-resident qkv slab (no HBM traffic, no in-kernel reshape).
    out_acc = jnp.zeros((L, d_model), dtype=jnp.float32)
    for h in range(H):
        q_h = qkv_c[:, h * D:(h + 1) * D]                        # (L, D), pre-scaled
        k_h = qkv_c[:, d_model + h * D:d_model + (h + 1) * D]    # (L, D)
        v_h = qkv_c[:, 2 * d_model + h * D:2 * d_model + (h + 1) * D]

        # Scores: NT matmul (contraction on the last dims, no explicit k.T).
        s = jax.lax.dot_general(q_h, k_h, (((1,), (1,)), ((), ())),
                                preferred_element_type=jnp.float32)  # (L, L)
        s = s + bias                                             # key-axis mask bias

        # Numerically stable f32 softmax; exact division (f32 accuracy).
        s = s - jnp.max(s, axis=-1, keepdims=True)
        p = jnp.exp(s)
        p = p / jnp.sum(p, axis=-1, keepdims=True)

        ctx_h = jnp.dot(p.astype(dt), v_h,
                        preferred_element_type=jnp.float32)      # (L, D)

        # Fused output projection:  out += ctx_h @ Wout[h*D:(h+1)*D, :]
        # (mathematically identical to concat(ctx) @ Wout; avoids concatenate).
        w_h = wout_ref[h * D:(h + 1) * D, :]                     # (D, Dm)
        out_acc = out_acc + jnp.dot(ctx_h.astype(dt), w_h,
                                    preferred_element_type=jnp.float32)

    out_acc = out_acc + bout_ref[...].astype(jnp.float32)
    o_ref[0] = out_acc.astype(o_ref.dtype)                       # lane-dense store


# --------------------------------------------------------------------------- #
# Full forward (eval mode: dropout is identity).
# --------------------------------------------------------------------------- #
def multi_head_attention(x, mask, wqkv, bqkv, wout, bout, *, n_heads: int):
    B, L, d_model = x.shape
    D = d_model // n_heads
    scale = float(D) ** -0.5

    # Fold 1/sqrt(D) into the Q projection columns (one-time, wrapper side):
    # softmax((x Wq s + bq s) k^T) == softmax(s * (x Wq + bq) k^T).
    col_scale = jnp.concatenate([
        jnp.full((d_model,), scale, dtype=jnp.float32),
        jnp.ones((2 * d_model,), dtype=jnp.float32)])
    wqkv_s = (wqkv.astype(jnp.float32) * col_scale[None, :]).astype(wqkv.dtype)
    bqkv_s = (bqkv.astype(jnp.float32) * col_scale[None, :]).astype(bqkv.dtype)

    # mask_to_bias precomputed once: 1 -> 0, 0 -> large finite negative.
    bias3 = jnp.where(mask.astype(jnp.float32) >= 1.0,
                      jnp.float32(0.0),
                      jnp.float32(_MASK_BIAS_MIN)).reshape(B, 1, L)

    kernel = functools.partial(_fused_mha_kernel, n_heads=n_heads)
    return pl.pallas_call(
        kernel,
        out_shape=jax.ShapeDtypeStruct((B, L, d_model), x.dtype),
        grid_spec=pltpu.PrefetchScalarGridSpec(
            num_scalar_prefetch=0,
            grid=(B,),                       # B >= 2 => both v7x TCs get work
            in_specs=[
                pl.BlockSpec((1, L, d_model), lambda b: (b, 0, 0)),
                pl.BlockSpec((1, 1, L), lambda b: (b, 0, 0)),
                pl.BlockSpec((d_model, 3 * d_model), lambda b: (0, 0)),
                pl.BlockSpec((1, 3 * d_model), lambda b: (0, 0)),
                pl.BlockSpec((d_model, d_model), lambda b: (0, 0)),
                pl.BlockSpec((1, d_model), lambda b: (0, 0)),
            ],
            out_specs=pl.BlockSpec((1, L, d_model), lambda b: (b, 0, 0)),
        ),
        compiler_params=pltpu.CompilerParams(
            dimension_semantics=("parallel",),
            vmem_limit_bytes=_vmem_limit_bytes()),
    )(x, bias3, wqkv_s, bqkv_s, wout, bout)


# --------------------------------------------------------------------------- #
# Pure-JAX reference mirroring the PyTorch forward (eval, sdpa path).
# --------------------------------------------------------------------------- #
def _reference(x, mask, wqkv, bqkv, wout, bout, *, n_heads: int):
    B, L, d_model = x.shape
    D = d_model // n_heads
    qkv = x @ wqkv + bqkv[0]                                      # (B, L, 3*Dm)
    q, k, v = jnp.split(qkv, 3, axis=-1)
    q = q.reshape(B, L, n_heads, D).transpose(0, 2, 1, 3)         # (B, N, L, D)
    k = k.reshape(B, L, n_heads, D).transpose(0, 2, 1, 3)
    v = v.reshape(B, L, n_heads, D).transpose(0, 2, 1, 3)
    bias = jnp.where(mask >= 1.0, 0.0, -jnp.inf)[:, None, None, :]
    s = jnp.einsum("bnqd,bnkd->bnqk", q, k) / jnp.sqrt(jnp.float32(D)) + bias
    p = jax.nn.softmax(s, axis=-1)
    o = jnp.einsum("bnqk,bnkd->bnqd", p, v)
    o = o.transpose(0, 2, 1, 3).reshape(B, L, d_model)
    return o @ wout + bout[0]


if __name__ == "__main__":
    # Small shapes consistent with the module: d_model=32, n_heads=4, L=8, B=2.
    B, L, d_model, n_heads = 2, 8, 32, 4
    key = jax.random.PRNGKey(0)
    k1, k2, k3, k4, k5 = jax.random.split(key, 5)

    x = jax.random.normal(k1, (B, L, d_model), dtype=jnp.float32)

    # Deterministic parameters (qkv_bias=True); stored as (in, out).
    wqkv = 0.02 * jax.random.normal(k2, (d_model, 3 * d_model), dtype=jnp.float32)
    bqkv = 0.02 * jax.random.normal(k3, (1, 3 * d_model), dtype=jnp.float32)
    wout = 0.02 * jax.random.normal(k4, (d_model, d_model), dtype=jnp.float32)
    bout = 0.02 * jax.random.normal(k5, (1, d_model), dtype=jnp.float32)

    # Boolean key mask (1 = keep, 0 = masked). Mask the last key of batch 0.
    mask = jnp.ones((B, L), dtype=jnp.float32).at[0, -1].set(0.0)

    # --- f32 path ---
    out = multi_head_attention(x, mask, wqkv, bqkv, wout, bout, n_heads=n_heads)
    out = jax.block_until_ready(out)
    ref = _reference(x, mask, wqkv, bqkv, wout, bout, n_heads=n_heads)
    assert out.shape == (B, L, d_model)
    assert jnp.allclose(out, ref, atol=2e-5, rtol=2e-3), "mismatch vs reference"

    # --- bf16 MXU path (smoke test; accumulation stays f32) ---
    out_bf16 = multi_head_attention(
        x.astype(jnp.bfloat16), mask,
        wqkv.astype(jnp.bfloat16), bqkv.astype(jnp.bfloat16),
        wout.astype(jnp.bfloat16), bout.astype(jnp.bfloat16),
        n_heads=n_heads)
    out_bf16 = jax.block_until_ready(out_bf16)
    assert out_bf16.shape == (B, L, d_model)
    assert float(jnp.max(jnp.abs(out_bf16.astype(jnp.float32) - ref))) < 5e-2

    print("KERNEL_OK")
</pallas_src>

<mosaic_0001>
module attributes {stable_mosaic.version = 11 : i64} {
  func.func @_fused_mha_kernel(%arg0: i32, %arg1: memref<1x8x32xf32, #tpu.memory_space<vmem>>, %arg2: memref<1x1x8xf32, #tpu.memory_space<vmem>>, %arg3: memref<32x96xf32, #tpu.memory_space<vmem>>, %arg4: memref<1x96xf32, #tpu.memory_space<vmem>>, %arg5: memref<32x32xf32, #tpu.memory_space<vmem>>, %arg6: memref<1x32xf32, #tpu.memory_space<vmem>>, %arg7: memref<1x8x32xf32, #tpu.memory_space<vmem>>) attributes {dimension_semantics = [#tpu.dimension_semantics<parallel>], iteration_bounds = array<i64: 2>, scalar_prefetch = 0 : i64, scratch_operands = 0 : i64, tpu.core_type = #tpu.core_type<tc>, window_params = [{transform_indices = @transform_0, window_bounds = array<i64: 1, 8, 32>}, {transform_indices = @transform_1, window_bounds = array<i64: 1, 1, 8>}, {pipeline_mode = #tpu.pipeline_mode<synchronous>, transform_indices = @transform_2, window_bounds = array<i64: 32, 96>}, {pipeline_mode = #tpu.pipeline_mode<synchronous>, transform_indices = @transform_3, window_bounds = array<i64: 1, 96>}, {pipeline_mode = #tpu.pipeline_mode<synchronous>, transform_indices = @transform_4, window_bounds = array<i64: 32, 32>}, {pipeline_mode = #tpu.pipeline_mode<synchronous>, transform_indices = @transform_5, window_bounds = array<i64: 1, 32>}, {transform_indices = @transform_6, window_bounds = array<i64: 1, 8, 32>}]} {
    %c0 = arith.constant 0 : index
    %c0_0 = arith.constant 0 : index
    %c0_1 = arith.constant 0 : index
    %0 = vector.load %arg1[%c0, %c0_0, %c0_1] : memref<1x8x32xf32, #tpu.memory_space<vmem>>, vector<1x8x32xf32>
    %1 = vector.shape_cast %0 : vector<1x8x32xf32> to vector<8x32xf32>
    %c0_2 = arith.constant 0 : index
    %c0_3 = arith.constant 0 : index
    %2 = vector.load %arg3[%c0_2, %c0_3] : memref<32x96xf32, #tpu.memory_space<vmem>>, vector<32x96xf32>
    %cst = arith.constant dense<0.000000e+00> : vector<8x96xf32>
    %3 = tpu.matmul %1, %2, %cst {dimension_numbers = #tpu.dot_dimension_numbers<[1], [0], [0], [1], [0, 0, 1, 1], [], []>} : vector<8x32xf32>, vector<32x96xf32>, vector<8x96xf32> -> vector<8x96xf32>
    %c0_4 = arith.constant 0 : index
    %c0_5 = arith.constant 0 : index
    %4 = vector.load %arg4[%c0_4, %c0_5] : memref<1x96xf32, #tpu.memory_space<vmem>>, vector<1x96xf32>
    %5 = vector.broadcast %4 : vector<1x96xf32> to vector<8x96xf32>
    %6 = arith.addf %3, %5 : vector<8x96xf32>
    %c0_6 = arith.constant 0 : index
    %c0_7 = arith.constant 0 : index
    %c0_8 = arith.constant 0 : index
    %7 = vector.load %arg2[%c0_6, %c0_7, %c0_8] : memref<1x1x8xf32, #tpu.memory_space<vmem>>, vector<1x1x8xf32>
    %8 = vector.shape_cast %7 : vector<1x1x8xf32> to vector<1x8xf32>
    %cst_9 = arith.constant 0.000000e+00 : f32
    %9 = vector.broadcast %cst_9 : f32 to vector<8x32xf32>
    %10 = vector.extract_strided_slice %6 {offsets = [0, 0], sizes = [8, 8], strides = [1, 1]} : vector<8x96xf32> to vector<8x8xf32>
    %11 = vector.extract_strided_slice %6 {offsets = [0, 32], sizes = [8, 8], strides = [1, 1]} : vector<8x96xf32> to vector<8x8xf32>
    %12 = vector.extract_strided_slice %6 {offsets = [0, 64], sizes = [8, 8], strides = [1, 1]} : vector<8x96xf32> to vector<8x8xf32>
    %cst_10 = arith.constant dense<0.000000e+00> : vector<8x8xf32>
    %13 = tpu.matmul %10, %11, %cst_10 {dimension_numbers = #tpu.dot_dimension_numbers<[1], [1], [0], [0], [0, 0, 1, 0], [], []>} : vector<8x8xf32>, vector<8x8xf32>, vector<8x8xf32> -> vector<8x8xf32>
    %14 = vector.broadcast %8 : vector<1x8xf32> to vector<8x8xf32>
    %15 = arith.addf %13, %14 : vector<8x8xf32>
    %cst_11 = arith.constant dense<0xFF800000> : vector<8xf32>
    %16 = vector.multi_reduction <maximumf>, %15, %cst_11 [1] : vector<8x8xf32> to vector<8xf32>
    %17 = vector.shape_cast %16 : vector<8xf32> to vector<8x1xf32>
    %18 = vector.broadcast %17 : vector<8x1xf32> to vector<8x8xf32>
    %19 = arith.subf %15, %18 : vector<8x8xf32>
    %20 = math.exp %19 : vector<8x8xf32>
    %cst_12 = arith.constant dense<0.000000e+00> : vector<8xf32>
    %21 = vector.multi_reduction <add>, %20, %cst_12 [1] : vector<8x8xf32> to vector<8xf32>
    %22 = vector.shape_cast %21 : vector<8xf32> to vector<8x1xf32>
    %23 = vector.broadcast %22 : vector<8x1xf32> to vector<8x8xf32>
    %24 = arith.divf %20, %23 : vector<8x8xf32>
    %cst_13 = arith.constant dense<0.000000e+00> : vector<8x8xf32>
    %25 = tpu.matmul %24, %12, %cst_13 {dimension_numbers = #tpu.dot_dimension_numbers<[1], [0], [0], [1], [0, 0, 1, 1], [], []>} : vector<8x8xf32>, vector<8x8xf32>, vector<8x8xf32> -> vector<8x8xf32>
    %c0_14 = arith.constant 0 : index
    %c0_15 = arith.constant 0 : index
    %26 = vector.load %arg5[%c0_14, %c0_15] : memref<32x32xf32, #tpu.memory_space<vmem>>, vector<8x32xf32>
    %cst_16 = arith.constant dense<0.000000e+00> : vector<8x32xf32>
    %27 = tpu.matmul %25, %26, %cst_16 {dimension_numbers = #tpu.dot_dimension_numbers<[1], [0], [0], [1], [0, 0, 1, 1], [], []>} : vector<8x8xf32>, vector<8x32xf32>, vector<8x32xf32> -> vector<8x32xf32>
    %28 = arith.addf %9, %27 : vector<8x32xf32>
    %29 = vector.extract_strided_slice %6 {offsets = [0, 8], sizes = [8, 8], strides = [1, 1]} : vector<8x96xf32> to vector<8x8xf32>
    %30 = vector.extract_strided_slice %6 {offsets = [0, 40], sizes = [8, 8], strides = [1, 1]} : vector<8x96xf32> to vector<8x8xf32>
    %31 = vector.extract_strided_slice %6 {offsets = [0, 72], sizes = [8, 8], strides = [1, 1]} : vector<8x96xf32> to vector<8x8xf32>
    %cst_17 = arith.constant dense<0.000000e+00> : vector<8x8xf32>
    %32 = tpu.matmul %29, %30, %cst_17 {dimension_numbers = #tpu.dot_dimension_numbers<[1], [1], [0], [0], [0, 0, 1, 0], [], []>} : vector<8x8xf32>, vector<8x8xf32>, vector<8x8xf32> -> vector<8x8xf32>
    %33 = vector.broadcast %8 : vector<1x8xf32> to vector<8x8xf32>
    %34 = arith.addf %32, %33 : vector<8x8xf32>
    %cst_18 = arith.constant dense<0xFF800000> : vector<8xf32>
    %35 = vector.multi_reduction <maximumf>, %34, %cst_18 [1] : vector<8x8xf32> to vector<8xf32>
    %36 = vector.shape_cast %35 : vector<8xf32> to vector<8x1xf32>
    %37 = vector.broadcast %36 : vector<8x1xf32> to vector<8x8xf32>
    %38 = arith.subf %34, %37 : vector<8x8xf32>
    %39 = math.exp %38 : vector<8x8xf32>
    %cst_19 = arith.constant dense<0.000000e+00> : vector<8xf32>
    %40 = vector.multi_reduction <add>, %39, %cst_19 [1] : vector<8x8xf32> to vector<8xf32>
    %41 = vector.shape_cast %40 : vector<8xf32> to vector<8x1xf32>
    %42 = vector.broadcast %41 : vector<8x1xf32> to vector<8x8xf32>
    %43 = arith.divf %39, %42 : vector<8x8xf32>
    %cst_20 = arith.constant dense<0.000000e+00> : vector<8x8xf32>
    %44 = tpu.matmul %43, %31, %cst_20 {dimension_numbers = #tpu.dot_dimension_numbers<[1], [0], [0], [1], [0, 0, 1, 1], [], []>} : vector<8x8xf32>, vector<8x8xf32>, vector<8x8xf32> -> vector<8x8xf32>
    %c8 = arith.constant 8 : index
    %c0_21 = arith.constant 0 : index
    %45 = vector.load %arg5[%c8, %c0_21] : memref<32x32xf32, #tpu.memory_space<vmem>>, vector<8x32xf32>
    %cst_22 = arith.constant dense<0.000000e+00> : vector<8x32xf32>
    %46 = tpu.matmul %44, %45, %cst_22 {dimension_numbers = #tpu.dot_dimension_numbers<[1], [0], [0], [1], [0, 0, 1, 1], [], []>} : vector<8x8xf32>, vector<8x32xf32>, vector<8x32xf32> -> vector<8x32xf32>
    %47 = arith.addf %28, %46 : vector<8x32xf32>
    %48 = vector.extract_strided_slice %6 {offsets = [0, 16], sizes = [8, 8], strides = [1, 1]} : vector<8x96xf32> to vector<8x8xf32>
    %49 = vector.extract_strided_slice %6 {offsets = [0, 48], sizes = [8, 8], strides = [1, 1]} : vector<8x96xf32> to vector<8x8xf32>
    %50 = vector.extract_strided_slice %6 {offsets = [0, 80], sizes = [8, 8], strides = [1, 1]} : vector<8x96xf32> to vector<8x8xf32>
    %cst_23 = arith.constant dense<0.000000e+00> : vector<8x8xf32>
    %51 = tpu.matmul %48, %49, %cst_23 {dimension_numbers = #tpu.dot_dimension_numbers<[1], [1], [0], [0], [0, 0, 1, 0], [], []>} : vector<8x8xf32>, vector<8x8xf32>, vector<8x8xf32> -> vector<8x8xf32>
    %52 = vector.broadcast %8 : vector<1x8xf32> to vector<8x8xf32>
    %53 = arith.addf %51, %52 : vector<8x8xf32>
    %cst_24 = arith.constant dense<0xFF800000> : vector<8xf32>
    %54 = vector.multi_reduction <maximumf>, %53, %cst_24 [1] : vector<8x8xf32> to vector<8xf32>
    %55 = vector.shape_cast %54 : vector<8xf32> to vector<8x1xf32>
    %56 = vector.broadcast %55 : vector<8x1xf32> to vector<8x8xf32>
    %57 = arith.subf %53, %56 : vector<8x8xf32>
    %58 = math.exp %57 : vector<8x8xf32>
    %cst_25 = arith.constant dense<0.000000e+00> : vector<8xf32>
    %59 = vector.multi_reduction <add>, %58, %cst_25 [1] : vector<8x8xf32> to vector<8xf32>
    %60 = vector.shape_cast %59 : vector<8xf32> to vector<8x1xf32>
    %61 = vector.broadcast %60 : vector<8x1xf32> to vector<8x8xf32>
    %62 = arith.divf %58, %61 : vector<8x8xf32>
    %cst_26 = arith.constant dense<0.000000e+00> : vector<8x8xf32>
    %63 = tpu.matmul %62, %50, %cst_26 {dimension_numbers = #tpu.dot_dimension_numbers<[1], [0], [0], [1], [0, 0, 1, 1], [], []>} : vector<8x8xf32>, vector<8x8xf32>, vector<8x8xf32> -> vector<8x8xf32>
    %c16 = arith.constant 16 : index
    %c0_27 = arith.constant 0 : index
    %64 = vector.load %arg5[%c16, %c0_27] : memref<32x32xf32, #tpu.memory_space<vmem>>, vector<8x32xf32>
    %cst_28 = arith.constant dense<0.000000e+00> : vector<8x32xf32>
    %65 = tpu.matmul %63, %64, %cst_28 {dimension_numbers = #tpu.dot_dimension_numbers<[1], [0], [0], [1], [0, 0, 1, 1], [], []>} : vector<8x8xf32>, vector<8x32xf32>, vector<8x32xf32> -> vector<8x32xf32>
    %66 = arith.addf %47, %65 : vector<8x32xf32>
    %67 = vector.extract_strided_slice %6 {offsets = [0, 24], sizes = [8, 8], strides = [1, 1]} : vector<8x96xf32> to vector<8x8xf32>
    %68 = vector.extract_strided_slice %6 {offsets = [0, 56], sizes = [8, 8], strides = [1, 1]} : vector<8x96xf32> to vector<8x8xf32>
    %69 = vector.extract_strided_slice %6 {offsets = [0, 88], sizes = [8, 8], strides = [1, 1]} : vector<8x96xf32> to vector<8x8xf32>
    %cst_29 = arith.constant dense<0.000000e+00> : vector<8x8xf32>
    %70 = tpu.matmul %67, %68, %cst_29 {dimension_numbers = #tpu.dot_dimension_numbers<[1], [1], [0], [0], [0, 0, 1, 0], [], []>} : vector<8x8xf32>, vector<8x8xf32>, vector<8x8xf32> -> vector<8x8xf32>
    %71 = vector.broadcast %8 : vector<1x8xf32> to vector<8x8xf32>
    %72 = arith.addf %70, %71 : vector<8x8xf32>
    %cst_30 = arith.constant dense<0xFF800000> : vector<8xf32>
    %73 = vector.multi_reduction <maximumf>, %72, %cst_30 [1] : vector<8x8xf32> to vector<8xf32>
    %74 = vector.shape_cast %73 : vector<8xf32> to vector<8x1xf32>
    %75 = vector.broadcast %74 : vector<8x1xf32> to vector<8x8xf32>
    %76 = arith.subf %72, %75 : vector<8x8xf32>
    %77 = math.exp %76 : vector<8x8xf32>
    %cst_31 = arith.constant dense<0.000000e+00> : vector<8xf32>
    %78 = vector.multi_reduction <add>, %77, %cst_31 [1] : vector<8x8xf32> to vector<8xf32>
    %79 = vector.shape_cast %78 : vector<8xf32> to vector<8x1xf32>
    %80 = vector.broadcast %79 : vector<8x1xf32> to vector<8x8xf32>
    %81 = arith.divf %77, %80 : vector<8x8xf32>
    %cst_32 = arith.constant dense<0.000000e+00> : vector<8x8xf32>
    %82 = tpu.matmul %81, %69, %cst_32 {dimension_numbers = #tpu.dot_dimension_numbers<[1], [0], [0], [1], [0, 0, 1, 1], [], []>} : vector<8x8xf32>, vector<8x8xf32>, vector<8x8xf32> -> vector<8x8xf32>
    %c24 = arith.constant 24 : index
    %c0_33 = arith.constant 0 : index
    %83 = vector.load %arg5[%c24, %c0_33] : memref<32x32xf32, #tpu.memory_space<vmem>>, vector<8x32xf32>
    %cst_34 = arith.constant dense<0.000000e+00> : vector<8x32xf32>
    %84 = tpu.matmul %82, %83, %cst_34 {dimension_numbers = #tpu.dot_dimension_numbers<[1], [0], [0], [1], [0, 0, 1, 1], [], []>} : vector<8x8xf32>, vector<8x32xf32>, vector<8x32xf32> -> vector<8x32xf32>
    %85 = arith.addf %66, %84 : vector<8x32xf32>
    %c0_35 = arith.constant 0 : index
    %c0_36 = arith.constant 0 : index
    %86 = vector.load %arg6[%c0_35, %c0_36] : memref<1x32xf32, #tpu.memory_space<vmem>>, vector<1x32xf32>
    %87 = vector.broadcast %86 : vector<1x32xf32> to vector<8x32xf32>
    %88 = arith.addf %85, %87 : vector<8x32xf32>
    %c0_37 = arith.constant 0 : index
    %c0_38 = arith.constant 0 : index
    %c0_39 = arith.constant 0 : index
    %89 = vector.load %arg7[%c0_37, %c0_38, %c0_39] : memref<1x8x32xf32, #tpu.memory_space<vmem>>, vector<1x8x32xf32>
    %90 = vector.shape_cast %89 : vector<1x8x32xf32> to vector<8x32xf32>
    %91 = vector.shape_cast %88 : vector<8x32xf32> to vector<1x8x32xf32>
    tpu.vector_store %arg7[%c0_37, %c0_38, %c0_39], %91 {strides = array<i32>} : memref<1x8x32xf32, #tpu.memory_space<vmem>>, vector<1x8x32xf32>,
    return
  }
  func.func @transform_0(%arg0: i32) -> (i32, i32, i32) {
    %c0_i32 = arith.constant 0 : i32
    %c0_i32_0 = arith.constant 0 : i32
    %c0_i32_1 = arith.constant 0 : i32
    return %arg0, %c0_i32, %c0_i32_0 : i32, i32, i32
  }
  func.func @transform_1(%arg0: i32) -> (i32, i32, i32) {
    %c0_i32 = arith.constant 0 : i32
    %c0_i32_0 = arith.constant 0 : i32
    %c0_i32_1 = arith.constant 0 : i32
    return %arg0, %c0_i32, %c0_i32_0 : i32, i32, i32
  }
  func.func @transform_2(%arg0: i32) -> (i32, i32) {
    %c0_i32 = arith.constant 0 : i32
    %c0_i32_0 = arith.constant 0 : i32
    %c0_i32_1 = arith.constant 0 : i32
    return %c0_i32, %c0_i32_0 : i32, i32
  }
  func.func @transform_3(%arg0: i32) -> (i32, i32) {
    %c0_i32 = arith.constant 0 : i32
    %c0_i32_0 = arith.constant 0 : i32
    %c0_i32_1 = arith.constant 0 : i32
    return %c0_i32, %c0_i32_0 : i32, i32
  }
  func.func @transform_4(%arg0: i32) -> (i32, i32) {
    %c0_i32 = arith.constant 0 : i32
    %c0_i32_0 = arith.constant 0 : i32
    %c0_i32_1 = arith.constant 0 : i32
    return %c0_i32, %c0_i32_0 : i32, i32
  }
  func.func @transform_5(%arg0: i32) -> (i32, i32) {
    %c0_i32 = arith.constant 0 : i32
    %c0_i32_0 = arith.constant 0 : i32
    %c0_i32_1 = arith.constant 0 : i32
    return %c0_i32, %c0_i32_0 : i32, i32
  }
  func.func @transform_6(%arg0: i32) -> (i32, i32, i32) {
    %c0_i32 = arith.constant 0 : i32
    %c0_i32_0 = arith.constant 0 : i32
    %c0_i32_1 = arith.constant 0 : i32
    return %arg0, %c0_i32, %c0_i32_0 : i32, i32, i32
  }
}

</mosaic_0001>

<bundles_post_ra>
// kernel: tpu_custom_call.1
= control target key start
LH: loop header
LB: loop body
LE: loop exit
PB: predicated region body
PF: predicated region fallthrough
CT: control target
= control target key end

     0   :  { %s1539_s0 = inlined_call_operand.hbm [shape: f32[2,8,32], index: 0, kind: input, shape index: {}]   ;;  %s1540_s1 = inlined_call_operand.hbm [shape: f32[2,1,8], index: 1, kind: input, shape index: {}]   ;;  %s1541_s2 = inlined_call_operand.hbm [shape: f32[32,96], index: 2, kind: input, shape index: {}]   ;;  %s1542_s3 = inlined_call_operand.vmem [shape: f32[1,96], index: 3, kind: input, shape index: {}]   ;;  %s1543_s4 = inlined_call_operand.hbm [shape: f32[32,32], index: 4, kind: input, shape index: {}]   ;;  %s1544_s5 = inlined_call_operand.vmem [shape: f32[1,32], index: 5, kind: input, shape index: {}]   ;;  %s1545_s6 = inlined_call_operand.hbm [shape: f32[2,8,32], index: 6, kind: output, shape index: {}]  }
   0x1   :  { %1547 = sst [smem:[#allocation18_spill]] %s1541_s2 }
   0x2   :  { %1548 = sst [smem:[#allocation19_spill]] %s1543_s4 }
   0x3   :  { %11 = vsyncpa [#allocation3], 0 }
   0x4   :  { %13 = vsyncpa [#allocation3 + $0x1], 0 }
   0x5   :  { %14 = vsyncpa [#allocation6], 0 }
   0x6   :  { %16 = vsyncpa [#allocation6 + $0x1], 0 }
   0x7   :  { %17 = vsyncpa [#allocation9], 0 }
   0x8   :  { %18 = vsyncpa [#allocation4], 0 }
   0x9   :  { %20 = vsyncpa [#allocation4 + $0x1], 0  ;;  %s1301_s21 = smov 0   ;;  %s1303_s22 = smov 0  }
   0xa   :  { %s1305_s23 = smov 0   ;;  %s1307_s24 = smov 0  }
   0xb LB: > { %1549 = sst [smem:[#allocation16_spill]] %s1245_s23  ;;  %s1325_s28 = sadd.s32 4294967295, %s1249_s24   ;;  %s1249_s24 = sphi %s1307_s24, %s1564_s24   ;;  %s1245_s23 = sphi %s1305_s23, %s1561_s23   ;;  %s1241_s22 = sphi %s1303_s22, %s1563_s22   ;;  %s1237_s21 = sphi %s1301_s21, %s1562_s21  }
   0xc   : > { %s1550_s2 = sld [smem:[#allocation18_spill]]  ;;  %p915_p0 = scmp.ge.s32.totalorder %s1249_s24, 1 }
   0xd   : > { %p47_p1 = scmp.eq.s32.totalorder %s1325_s28, 0  ;;  %p193_p2 = scmp.lt.s32.totalorder %s1249_s24, 3 }
   0xe   : > { %s1251_s30 = smov [#allocation7]   ;;  %s1552_s4 = sld [smem:[#allocation19_spill]] }
   0xf   : > { %p1330_p3 = pnand %p915_p0, %p193_p2  ;;  %s206_s7 = sshll.u32 %s1251_s30, 4  ;;  %s207_s7 = int_to_ptr.vmem [resolvable:$true] %s206_s7 }
  0x10   : > { %s1252_s11 = smov [#allocation8]   ;;  %s1253_s13 = smov 128  }
  0x11   : > { %p961_p4 = pneg %p1330_p3  ;;  %s223_s12 = sshll.u32 %s1252_s11, 4  ;;  %s224_s12 = int_to_ptr.vmem [resolvable:$true] %s223_s12 }
  0x12   : > { %s204_s27 = sshll.u32 %s1550_s2, 4  ;;  %s1254_s14 = smov 8   ;;  %s205_s27 = int_to_ptr.hbm [resolvable:$true] %s204_s27 }
  0x13   : > { %p962_p6 = pnand %p961_p4, %p47_p1  ;;  %s914_s15 = sadd.s32 4294967294, %s1249_s24  }
  0x14   : > { %s221_s10 = sshll.u32 %s1552_s4, 4  ;;  %s1344_s16 = sadd.s32 1, %s1249_s24   ;;  %s222_s10 = int_to_ptr.hbm [resolvable:$true] %s221_s10 }
  0x15   : > { %964 = dma.hbm_to_vmem [thread:$0]  (!%p962_p6), %s205_s27, 512, %s207_s7, [#allocation6], %s1253_s13, %s1253_s13, %s1254_s14  }
  0x16   : > { %967 = dma.hbm_to_vmem [thread:$0]  (!%p962_p6), %s222_s10, 512, %s224_s12, [#allocation9], %s1253_s13, %s1253_s13, %s1254_s14  }
  0x17   : > { %s30_s17 = ssub.s32 %s1249_s24, %s1344_s16  ;;  %s33_s18 = sadd.s32 1, %s1245_s23 }
  0x18   : > { %p31_p7 = scmp.eq.s32.totalorder %s30_s17, 0  ;;  %p40_p8 = scmp.ne.s32.totalorder %s1245_s23, %s1241_s22 }
  0x19   : > { %p41_p9 = scmp.eq.s32.totalorder %s1249_s24, 0  ;;  %p46_p10 = scmp.ne.s32.totalorder %s1241_s22, %s1237_s21 }
  0x1a   : > { %s1355_s19 = scalar_select %p31_p7, %s1245_s23, %s33_s18  }
  0x1b   : > { %p1357_p11 = por %p41_p9, %p40_p8  ;;  %p1363_p12 = por %p47_p1, %p46_p10 }
  0x1c   : > { %1553 = sst [smem:[#allocation17_spill]] %s1355_s19  ;;  %p180_p13 = scmp.eq.s32.totalorder %s1325_s28, 1 }
  0x1d   : > { %p186_p0 = scmp.eq.s32.totalorder %s914_s15, 1  ;;  %p981_p2 = scmp.lt.s32.totalorder %s1249_s24, 2 }
  0x1e   : > { %s1370_s26 = sand.u32 1, %s1245_s23   ;;  %p1372_p4 = por %p180_p13, %p40_p8 }
  0x1f   : > { %p1376_p6 = por %p186_p0, %p46_p10  ;;  %s919_s7 = sshll.u32 %s1370_s26, 3 }
  0x20   : > { %s920_s8 = sshll.u32 %s1249_s24, 3  ;;  %s244_s12 = scalar_lea.vmem [#allocation2], %s919_s7 }
  0x21   : > { %s248_s11 = scalar_lea.hbm %s1539_s0, %s920_s8  ;;  %s252_s13 = sshll.u32 %s244_s12, 4  ;;  %s253_s13 = int_to_ptr.vmem [resolvable:$true] %s252_s13 }
  0x22   : > { %s250_s14 = sshll.u32 %s248_s11, 4  ;;  %p1387_p7 = pnand %p981_p2, %p1357_p11  ;;  %s251_s14 = int_to_ptr.hbm [resolvable:$true] %s250_s14 }
  0x23   : > { %s259_s17 = sand.u32 1, %s1249_s24   ;;  %s241_s18 = scalar_lea.sflag [#allocation3], %s1370_s26 }
  0x24   : > { %s1111_s2 = sshra.s32 %s251_s14, 4  ;;  %p1115_p9 = pneg %p1387_p7  ;;  %s1112_s2 = int_to_ptr.hbm [resolvable:$true] %s1111_s2 }
  0x25   : > { %s1113_s4 = scalar_lea.hbm %s1112_s2, 8  ;;  %s1118_s8 = scalar_lea.hbm %s1539_s0, 16 }
  0x26   : > { %p1114_p8 = scmp.ne.s32.totalorder %s1112_s2, %s1113_s4  ;;  %p1119_p11 = scmp.lt.s32.totalorder %s1112_s2, %s1539_s0 }
  0x27   : > { %p1120_p0 = scmp.lt.s32.totalorder %s1118_s8, %s1113_s4 }
  0x28   : > { %p1116_p10 = pnand %p1115_p9, %p1114_p8 }
  0x29   : > { %p1121_p2 = por %p1120_p0, %p1119_p11 }
  0x2a   : > { %p1117_p13 = pneg %p1116_p10 }
  0x2c   : > { %p1122_p5 = pnand %p1121_p2, %p1117_p13 }
  0x2e   : > { %1125 = shalt.err (!%p1122_p5)
}
  0x2f   : > { %971 = dma.hbm_to_vmem [thread:$0]  (!%p1387_p7), %s251_s14, 128, %s253_s13, %s241_s18  }
  0x30   : > { %s265_s19 = scalar_lea.hbm %s1540_s1, %s1249_s24  ;;  %s262_s7 = scalar_lea.vmem [#allocation5], %s1370_s26 }
  0x31   : > { %s269_s20 = sshll.u32 %s262_s7, 4  ;;  %s267_s23 = sshll.u32 %s265_s19, 4  ;;  %s270_s20 = int_to_ptr.vmem [resolvable:$true] %s269_s20  ;;  %s268_s23 = int_to_ptr.hbm [resolvable:$true] %s267_s23 }
  0x32   : > { %s260_s2 = scalar_lea.sflag [#allocation6], %s259_s17  ;;  %s1141_s4 = sshra.s32 %s268_s23, 4  ;;  %s1142_s4 = int_to_ptr.hbm [resolvable:$true] %s1141_s4 }
  0x33   : > { %s1143_s8 = scalar_lea.hbm %s1142_s4, 1  ;;  %s1148_s14 = scalar_lea.hbm %s1540_s1, 2 }
  0x34   : > { %p1144_p5 = scmp.ne.s32.totalorder %s1142_s4, %s1143_s8  ;;  %p1149_p13 = scmp.lt.s32.totalorder %s1142_s4, %s1540_s1 }
  0x35   : > { %p1150_p11 = scmp.lt.s32.totalorder %s1148_s14, %s1143_s8 }
  0x36   : > { %p1146_p8 = pnand %p1144_p5, %p1115_p9 }
  0x37   : > { %p1151_p0 = por %p1150_p11, %p1149_p13 }
  0x38   : > { %p1147_p10 = pneg %p1146_p8 }
  0x3a   : > { %p1152_p2 = pnand %p1151_p0, %p1147_p10 }
  0x3c   : > { %1155 = shalt.err (!%p1152_p2)
}
  0x3d   : > { %974 = dma.hbm_to_vmem [thread:$0]  (!%p1387_p7), %s268_s23, 16, %s270_s20, %s260_s2  }
  0x3e   : > { %278 = sbr.rel (%p1330_p3) target bundleno = 1533 (0x5fd), region = 44  ;;  %s1425_s19 = sand.u32 (!%p1330_p3), 1, %s1241_s22  }
  0x3f   : > { %s922_s26 = sshll.u32 (!%p1330_p3), %s1425_s19, 3  ;;  %s281_s17 = scalar_lea.sflag (!%p1330_p3), [#allocation3], %s1425_s19 }
  0x40   : > { %s284_s11 = scalar_lea.vmem (!%p1330_p3), [#allocation2], %s922_s26 }
  0x43   : > { %1216 = dma.done.wait (%p1363_p12), %s281_s17, 128  }
  0x44   : > { %1218 = vsyncadd (%p1363_p12), %s281_s17, 4294967168  ;;  %s290_s23 = sand.u32 1, %s1325_s28   ;;  %s293_s15 = scalar_lea.vmem [#allocation5], %s1425_s19 }
  0x45   : > { %s291_s29 = scalar_lea.sflag [#allocation6], %s290_s23 }
  0x46   : > { %1220 = dma.done.wait (%p1363_p12), %s291_s29, 16  }
  0x47   : > { %1222 = vsyncadd (%p1363_p12), %s291_s29, 4294967280 }
  0x48   : > { %1224 = dma.done.wait (%p47_p1), [#allocation6], 512  }
  0x49   : > { %1226 = vsyncadd (%p47_p1), [#allocation6], 4294966784 }
  0x4a   : > { %1228 = dma.done.wait (%p47_p1), [#allocation9], 512  }
  0x4b   : > { %1230 = vsyncadd (%p47_p1), [#allocation9], 4294966784  ;;  %v341_v0 = vld [vmem:[#allocation7 + $0x18] sm:$0xff]  ;;  %v340_v1 = vld [vmem:[#allocation7 + $0x10] sm:$0xff]  ;;  %vm346_vm0 = vcmask 261120   ;;  %s1255_s7 = smov 88  }
  0x4c   : > { %362 = vmatpush.msra.mxu0 %v341_v0  ;;  %v339_v2 = vld [vmem:[#allocation7 + $0x8] sm:$0xff]  ;;  %v338_v3 = vld [vmem:[#allocation7] sm:$0xff]  ;;  %s1256_s20 = smov 96   ;;  %s1257_s2 = smov 120   ;;  %vm377_vm1 = vcmask 64512  }
  0x4d   : > { %v337_v4 = vld [vmem:[%s284_s11] sm:$0xff]  ;;  %s1258_s4 = smov 72   ;;  %s1259_s8 = smov 104   ;;  %v452_v8 = vld [vmem:[#allocation8] sm:$0xff] }
  0x4e   : > { %363 = vmatpush.msra.mxu0 %v340_v1  ;;  %v1032_v5 = vld [vmem:[%s1542_s3] ss:$0 sm:$0xff]  ;;  %s1260_s9 = smov 80   ;;  %s1261_s13 = smov 56  }
  0x4f   : > { %v1033_v15 = vld [vmem:[%s293_s15] ss:$0 sm:$0xff]  ;;  %s1262_s14 = smov 64   ;;  %s1263_s18 = smov 112  }
  0x50   : > { %364 = vmatpush.msra.mxu0 %v339_v2  ;;  %s1264_s10 = smov 40   ;;  %s1265_s17 = smov 48  }
  0x51   : > { %s944_s11 = sshll.u32 %s1325_s28, 3  ;;  %s791_s28 = scalar_lea.sflag [#allocation4], %s1425_s19 }
  0x52   : > { %365 = vmatpush.msra.mxu0 %v338_v3  ;;  %s801_s15 = scalar_lea.hbm %s1545_s6, %s944_s11 }
  0x53   : > { %926 = vmatmul.msk.f32.vlgmr.msra.gmra.mxu0 %vm346_vm0, %v337_v4 }
  0xd0   : > { %v367_v6 = vpop.f32.mrf.mxu0 }
  0xd1   : > { %v1453_v7 = vadd.f32 %v1032_v5, %v367_v6 }
  0xd3   : > { %455 = vrot.lane.b32.xlu2 %v1453_v7, %s1255_s7  ;;  %375 = vrot.lane.b32.xlu0 %v1453_v7, %s1256_s20  ;;  %s336_s7 = scalar_lea.vmem [#allocation10], %s922_s26  ;;  %s1191_s26 = scalar_lea.hbm %s1545_s6, 16 }
  0xd4   : > { %s803_s20 = sshll.u32 %s336_s7, 4  ;;  %s804_s20 = int_to_ptr.vmem [resolvable:$true] %s803_s20 }
  0xdb   : > { %453 = vrot.lane.b32.xlu2 %v1453_v7, %s1257_s2  ;;  %s805_s2 = sshll.u32 %s801_s15, 4  ;;  %s806_s2 = int_to_ptr.hbm [resolvable:$true] %s805_s2 }
  0xe3   : > { %683 = vrot.lane.b32.xlu2 %v1453_v7, %s1258_s4  ;;  %s1185_s4 = sshra.s32 %s806_s2, 4  ;;  %s1186_s4 = int_to_ptr.hbm [resolvable:$true] %s1185_s4 }
  0xe4   : > { %p1192_p7 = scmp.lt.s32.totalorder %s1186_s4, %s1545_s6 }
  0xeb   : > { %681 = vrot.lane.b32.xlu2 %v1453_v7, %s1259_s8  ;;  %s1187_s8 = scalar_lea.hbm %s1186_s4, 8 }
  0xec   : > { %p1188_p1 = scmp.ne.s32.totalorder %s1186_s4, %s1187_s8  ;;  %p1193_p9 = scmp.lt.s32.totalorder %s1191_s26, %s1187_s8 }
  0xee   : > { %p1189_p3 = pnand %p1188_p1, %p1372_p4  ;;  %p1194_p5 = por %p1193_p9, %p1192_p7 }
  0xf0   : > { %p1190_p12 = pneg %p1189_p3 }
  0xf2   : > { %p1195_p8 = pnand %p1194_p5, %p1190_p12 }
  0xf3   : > { %580 = vrot.lane.b32.xlu2 %v1453_v7, %s1260_s9 }
 0x12d   : > { %v456_v9 = vpop.permute.xlu2 %455 }
 0x12e   : > { %930 = vmatpush.xpose.msk.msra.mxu3 %vm377_vm1, %v456_v9 }
 0x132   : > { %573 = vmatpush.msrb.mxu3 %v452_v8 }
 0x135   : > { %v454_v10 = vpop.permute.xlu2 %453 }
 0x136   : > { %931 = vmatmul.msk.f32.vlgmr.msra.gmra.mxu3 %vm377_vm1, %v454_v10 }
 0x13d   : > { %v684_v11 = vpop.permute.xlu2 %683 }
 0x13e   : > { %939 = vmatpush.xpose.msk.msra.mxu3 %vm377_vm1, %v684_v11 }
 0x145   : > { %v682_v12 = vpop.permute.xlu2 %681  ;;  %v376_v13 = vpop.permute.xlu0 %375 }
 0x146   : > { %927 = vmatpush.xpose.msk.msra.mxu1 %vm377_vm1, %v376_v13 }
 0x149   : > { %928 = vmatmul.msk.f32.vlgmr.msra.gmra.mxu1 %vm377_vm1, %v1453_v7 }
 0x14d   : > { %v581_v14 = vpop.permute.xlu2 %580 }
 0x14e   : > { %935 = vmatpush.xpose.msk.msrb.mxu0 %vm377_vm1, %v581_v14 }
 0x1b9   : > { %v478_v16 = vpop.f32.mrf.mxu3 }
 0x1ba   : > { %v479_v17 = vadd.f32 %v1033_v15, %v478_v16 }
 0x1bc   : > { %v481_v18 = vsel %vm377_vm1, %v479_v17, -inf }
 0x1bd   : > { %482 = vmax.xlane.f32.xlu2 %v481_v18  ;;  %v531_v18 = vld [vmem:[#allocation8 + $0x8] sm:$0xff] }
 0x1be   : > { %550 = vmatpush.msrb.mxu1 %v531_v18 }
 0x1c6   : > { %v399_v19 = vpop.f32.mrf.mxu1 }
 0x1c7   : > { %v400_v20 = vadd.f32 %v1033_v15, %v399_v19 }
 0x1c9   : > { %v402_v21 = vsel %vm377_vm1, %v400_v20, -inf }
 0x1ca   : > { %403 = vmax.xlane.f32.xlu0 %v402_v21 }
 0x1d5   : > { %505 = vrot.lane.b32.xlu2 %v1453_v7, %s1261_s13 }
 0x230   : > { %v483_v34 = vpop.xlane.xlu2 %482 }
 0x231   : > { %v484_v48 = vsub.f32 %v479_v17, %v483_v34 }
 0x233   : > { %v485_v50 = vmul.f32 1.442695, %v484_v48 }
 0x238   : > { %v506_v41 = vpop.permute.xlu2 %505 }
 0x23d   : > { %v404_v22 = vpop.xlane.xlu0 %403 }
 0x23e   : > { %v405_v23 = vsub.f32 %v400_v20, %v404_v22 }
 0x240   : > { %v406_v24 = vmul.f32 1.442695, %v405_v23 }
 0x242   : > { %1035 = vpow2.f32 %v406_v24 }
 0x248   : > { %v1036_v25 = vpop.eup %1035 }
 0x249   : > { %v408_v26 = vsel %vm377_vm1, %v1036_v25, 0.0 }
 0x24a   : > { %409 = vadd.xlane.f32.xlu1 %v408_v26 }
 0x263   : > { %426 = vrot.lane.b32.xlu1 %v1453_v7, %s1262_s14 }
 0x26b   : > { %578 = vrot.lane.b32.xlu1 %v1453_v7, %s1263_s18 }
 0x2bd   : > { %v410_v27 = vpop.xlane.xlu1 %409 }
 0x2be   : > { %1037 = vrcp.f32 %v410_v27  ;;  %v422_v33 = vand.u32 2147483648, %v410_v27  ;;  %vm416_vm3 = vweird.f32 %v410_v27  ;;  %v420_v35 = vand.u32 2147483647, %v410_v27 }
 0x2bf   : > { %1039 = vpow2.f32 %v485_v50  ;;  %v1034_v50 = vld [vmem:[%s1544_s5] ss:$0 sm:$0xff] }
 0x2c0   : > { %v423_v37 = vor.u32 1.1754944e-38, %v422_v33  ;;  %vm421_vm5 = vcmp.eq.f32.partialorder %v420_v35, 8.507059e+37 }
 0x2c4   : > { %v1038_v28 = vpop.eup %1037 }
 0x2c5   : > { %v412_v29 = vmul.f32 %v1038_v28, %v410_v27  ;;  %vm417_vm2 = vweird.f32 %v1038_v28  ;;  %v1040_v57 = vpop.eup %1039 }
 0x2c6   : > { %vm418_vm4 = vmor %vm416_vm3, %vm417_vm2  ;;  %v487_v58 = vsel %vm377_vm1, %v1040_v57, 0.0 }
 0x2c7   : > { %v413_v30 = vsub.f32 1.0, %v412_v29 }
 0x2c9   : > { %v414_v31 = vmul.f32 %v1038_v28, %v413_v30 }
 0x2cb   : > { %v415_v32 = vadd.f32 %v1038_v28, %v414_v31 }
 0x2cd   : > { %v419_v36 = vsel %vm418_vm4, %v1038_v28, %v415_v32 }
 0x2ce   : > { %v424_v38 = vsel %vm421_vm5, %v423_v37, %v419_v36 }
 0x2cf   : > { %v425_v40 = vmul.f32 %v1036_v25, %v424_v38 }
 0x2d5   : > { %v427_v39 = vpop.permute.xlu1 %426 }
 0x2d6   : > { %447 = vmatpush.msra.mxu2 %v427_v39 }
 0x2d7   : > { %929 = vmatmul.msk.f32.vlgmr.msra.gmra.mxu2 %vm377_vm1, %v425_v40 }
 0x2d8   : > { %526 = vmatpush.msrb.mxu2 %v506_v41  ;;  %v759_v41 = vld [vmem:[#allocation8 + $0x18] sm:$0xff] }
 0x2dd   : > { %v579_v42 = vpop.permute.xlu1 %578 }
 0x2de   : > { %936 = vmatmul.msk.f32.vlgmr.msrb.gmra.mxu0 %vm377_vm1, %v579_v42  ;;  %v656_v42 = vld [vmem:[#allocation8 + $0x10] sm:$0xff] }
 0x2df   : > { %675 = vmatpush.msra.mxu1 %v656_v42 }
 0x35a   : > { %v449_v43 = vpop.f32.mrf.mxu2 }
 0x35b   : > { %934 = vmatmul.msk.f32.vlgmr.msrb.gmra.mxu3 %vm377_vm1, %v449_v43  ;;  %v603_v44 = vpop.f32.mrf.mxu0 }
 0x35c   : > { %v604_v45 = vadd.f32 %v1033_v15, %v603_v44 }
 0x35e   : > { %v606_v46 = vsel %vm377_vm1, %v604_v45, -inf }
 0x35f   : > { %607 = vmax.xlane.f32.xlu1 %v606_v46 }
 0x363   : > { %940 = vmatmul.msk.f32.vlgmr.msra.gmra.mxu3 %vm377_vm1, %v682_v12 }
 0x378   : > { %733 = vrot.lane.b32.xlu1 %v1453_v7, %s1264_s10 }
 0x3d2   : > { %v608_v49 = vpop.xlane.xlu1 %607 }
 0x3d3   : > { %v609_v53 = vsub.f32 %v604_v45, %v608_v49 }
 0x3d5   : > { %v610_v56 = vmul.f32 1.442695, %v609_v53 }
 0x3d7   : > { %1041 = vpow2.f32 %v610_v56 }
 0x3dd   : > { %v1486_v59 = vpop.eup %1041 }
 0x3de   : > { %v1482_v47 = vpop.f32.mrf.mxu3  ;;  %v612_v60 = vsel %vm377_vm1, %v1486_v59, 0.0 }
 0x3e6   : > { %v706_v51 = vpop.f32.mrf.mxu3 }
 0x3e7   : > { %v707_v52 = vadd.f32 %v1033_v15, %v706_v51 }
 0x3e9   : > { %v709_v54 = vsel %vm377_vm1, %v707_v52, -inf }
 0x3ea   : > { %710 = vmax.xlane.f32.xlu0 %v709_v54  ;;  %v734_v55 = vpop.permute.xlu1 %733 }
 0x3eb   : > { %754 = vmatpush.msra.mxu0 %v734_v55 }
 0x3f2   : > { %488 = vadd.xlane.f32.xlu0 %v487_v58 }
 0x3fa   : > { %613 = vadd.xlane.f32.xlu0 %v612_v60 }
 0x45d   : > { %v711_v61 = vpop.xlane.xlu0 %710 }
 0x45e   : > { %v712_v62 = vsub.f32 %v707_v52, %v711_v61 }
 0x460   : > { %v713_v63 = vmul.f32 1.442695, %v712_v62 }
 0x462   : > { %1043 = vpow2.f32 %v713_v63 }
 0x465   : > { %v489_v0 = vpop.xlane.xlu0 %488 }
 0x466   : > { %1045 = vrcp.f32 %v489_v0  ;;  %v501_v6 = vand.u32 2147483648, %v489_v0  ;;  %v499_v9 = vand.u32 2147483647, %v489_v0  ;;  %vm495_vm7 = vweird.f32 %v489_v0 }
 0x468   : > { %v1044_v1 = vpop.eup %1043  ;;  %v502_v11 = vor.u32 1.1754944e-38, %v501_v6  ;;  %vm500_vm9 = vcmp.eq.f32.partialorder %v499_v9, 8.507059e+37 }
 0x469   : > { %v715_v2 = vsel %vm377_vm1, %v1044_v1, 0.0 }
 0x46a   : > { %716 = vadd.xlane.f32.xlu0 %v715_v2 }
 0x46c   : > { %v1046_v3 = vpop.eup %1045 }
 0x46d   : > { %v491_v4 = vmul.f32 %v1046_v3, %v489_v0  ;;  %vm496_vm6 = vweird.f32 %v1046_v3  ;;  %v614_v15 = vpop.xlane.xlu0 %613 }
 0x46e   : > { %vm497_vm8 = vmor %vm495_vm7, %vm496_vm6  ;;  %1047 = vrcp.f32 %v614_v15  ;;  %v626_v25 = vand.u32 2147483648, %v614_v15  ;;  %vm620_vm11 = vweird.f32 %v614_v15  ;;  %v624_v27 = vand.u32 2147483647, %v614_v15 }
 0x46f   : > { %v492_v5 = vsub.f32 1.0, %v491_v4 }
 0x470   : > { %v627_v31 = vor.u32 1.1754944e-38, %v626_v25  ;;  %vm625_vm15 = vcmp.eq.f32.partialorder %v624_v27, 8.507059e+37 }
 0x471   : > { %v493_v8 = vmul.f32 %v1046_v3, %v492_v5 }
 0x473   : > { %v494_v10 = vadd.f32 %v1046_v3, %v493_v8 }
 0x474   : > { %v1048_v16 = vpop.eup %1047 }
 0x475   : > { %v498_v12 = vsel %vm497_vm8, %v1046_v3, %v494_v10  ;;  %v616_v17 = vmul.f32 %v1048_v16, %v614_v15  ;;  %vm621_vm10 = vweird.f32 %v1048_v16 }
 0x476   : > { %v503_v13 = vsel %vm500_vm9, %v502_v11, %v498_v12  ;;  %vm622_vm12 = vmor %vm620_vm11, %vm621_vm10 }
 0x477   : > { %v504_v14 = vmul.f32 %v1040_v57, %v503_v13  ;;  %v617_v20 = vsub.f32 1.0, %v616_v17 }
 0x479   : > { %932 = vmatmul.msk.f32.vlgmr.msrb.gmra.mxu2 %vm377_vm1, %v504_v14  ;;  %v618_v21 = vmul.f32 %v1048_v16, %v617_v20 }
 0x47b   : > { %v619_v24 = vadd.f32 %v1048_v16, %v618_v21 }
 0x47d   : > { %v623_v30 = vsel %vm622_vm12, %v1048_v16, %v619_v24 }
 0x47e   : > { %630 = vrot.lane.b32.xlu0 %v1453_v7, %s1265_s17  ;;  %v628_v34 = vsel %vm625_vm15, %v627_v31, %v623_v30 }
 0x47f   : > { %v629_v39 = vmul.f32 %v1486_v59, %v628_v34 }
 0x4dd   : > { %v717_v19 = vpop.xlane.xlu0 %716 }
 0x4de   : > { %1049 = vrcp.f32 %v717_v19  ;;  %v729_v28 = vand.u32 2147483648, %v717_v19  ;;  %v727_v29 = vand.u32 2147483647, %v717_v19  ;;  %vm723_vm14 = vweird.f32 %v717_v19 }
 0x4e0   : > { %v730_v33 = vor.u32 1.1754944e-38, %v729_v28  ;;  %vm728_vm3 = vcmp.eq.f32.partialorder %v727_v29, 8.507059e+37 }
 0x4e4   : > { %v1050_v22 = vpop.eup %1049 }
 0x4e5   : > { %v719_v23 = vmul.f32 %v1050_v22, %v717_v19  ;;  %vm724_vm13 = vweird.f32 %v1050_v22 }
 0x4e6   : > { %vm725_vm2 = vmor %vm723_vm14, %vm724_vm13 }
 0x4e7   : > { %v720_v26 = vsub.f32 1.0, %v719_v23 }
 0x4e9   : > { %v721_v7 = vmul.f32 %v1050_v22, %v720_v26 }
 0x4eb   : > { %v722_v32 = vadd.f32 %v1050_v22, %v721_v7 }
 0x4ed   : > { %v726_v35 = vsel %vm725_vm2, %v1050_v22, %v722_v32 }
 0x4ee   : > { %v731_v36 = vsel %vm728_vm3, %v730_v33, %v726_v35 }
 0x4ef   : > { %v732_v37 = vmul.f32 %v1044_v1, %v731_v36 }
 0x4f0   : > { %v631_v38 = vpop.permute.xlu0 %630 }
 0x4f1   : > { %651 = vmatpush.msra.mxu2 %v631_v38  ;;  %941 = vmatmul.msk.f32.vlgmr.msra.gmra.mxu0 %vm377_vm1, %v732_v37 }
 0x4f2   : > { %937 = vmatmul.msk.f32.vlgmr.msra.gmra.mxu2 %vm377_vm1, %v629_v39 }
 0x4f3   : > { %778 = vmatpush.msrb.mxu2 %v759_v41 }
 0x4fc   : > { %v528_v40 = vpop.f32.mrf.mxu2 }
 0x4fd   : > { %933 = vmatmul.msk.f32.vlgmr.msrb.gmra.mxu1 %vm377_vm1, %v528_v40 }
 0x56e   : > { %v756_v43 = vpop.f32.mrf.mxu0 }
 0x56f   : > { %942 = vmatmul.msk.f32.vlgmr.msrb.gmra.mxu2 %vm377_vm1, %v756_v43 }
 0x575   : > { %v653_v44 = vpop.f32.mrf.mxu2 }
 0x576   : > { %938 = vmatmul.msk.f32.vlgmr.msra.gmra.mxu1 %vm377_vm1, %v653_v44 }
 0x57a   : > { %v552_v45 = vpop.f32.mrf.mxu1 }
 0x57b   : > { %v576_v46 = vadd.f32 %v1482_v47, %v552_v45 }
 0x5f2   : > { %v780_v51 = vpop.f32.mrf.mxu2 }
 0x5f3   : > { %v677_v48 = vpop.f32.mrf.mxu1 }
 0x5f4   : > { %v680_v49 = vadd.f32 %v677_v48, %v576_v46 }
 0x5f6   : > { %v783_v52 = vadd.f32 %v780_v51, %v680_v49 }
 0x5f8   : > { %v788_v53 = vadd.f32 %v1034_v50, %v783_v52 }
 0x5fa   : > { %789 = vst.msk [vmem:[%s336_s7] sm:$0xff] %vm346_vm0, %v788_v53 }
 0x5fb   : > { %1198 = shalt.err (!%p1195_p8)
}
 0x5fc   : > { %959 = dma.vmem_to_hbm [thread:$0]  (%p1372_p4), %s804_s20, 128, %s806_s2, %s791_s28  }
 0x5fd PF: > { %s817_s19 = sand.u32 1, %s1237_s21   ;;  %p1559_p10 = scmp.ge.s32.totalorder %s1249_s24, 2 }
 0x5fe   : > { %s818_s10 = scalar_lea.sflag [#allocation4], %s817_s19 }
 0x5ff   : > { %p976_p13 = pnand %p1559_p10, %p1376_p6 }
 0x601   : > { %p977_p11 = pneg %p976_p13 }
 0x603   : > { %1232 = dma.done.wait (%p977_p11), %s818_s10, 128  }
 0x604   : > { %1234 = vsyncadd (%p977_p11), %s818_s10, 4294967168  ;;  %s1560_s17 = sld [smem:[#allocation16_spill]]  ;;  %p23_p0 = scmp.ge.s32.totalorder %s1344_s16, 4  }
 0x605   : > { %s1561_s23 = sld [smem:[#allocation17_spill]]  ;;  %s1562_s21 = smov %s1241_s22 }
 0x606   : > { %s1564_s24 = smov %s1344_s16  ;;  %25 = sbr.rel (!%p23_p0) target bundleno = 11 (0xb), region = 110 }
 0x60a   : > { %s1563_s22 = smov %s1560_s17 }
 0x60b   :  { %824 = vsyncpa [#allocation3], 1 }
 0x60c   :  { %826 = vsyncpa [#allocation3 + $0x1], 1 }
 0x60d   :  { %827 = vsyncpa [#allocation6], 1 }
 0x60e   :  { %829 = vsyncpa [#allocation6 + $0x1], 1 }
 0x60f   :  { %830 = vsyncpa [#allocation9], 1 }
 0x610   :  { %831 = vsyncpa [#allocation4], 1 }
 0x611   :  { %833 = vsyncpa [#allocation4 + $0x1], 1 }

</bundles_post_ra>
